<compile_context>
chip_gen: v6e
topology: v6e:2x2x1
jax: 0.10.0
libtpu: 0.0.40
codegen_flags: <defaults>
</compile_context>

<pallas_src>
import functools

import jax
import jax.numpy as jnp
from jax.experimental import pallas as pl
from jax.experimental.pallas import tpu as pltpu

_LANE = 128     # vreg lane width  (last dim)
_SUBLANE = 8    # vreg sublane     (second-to-last dim)


def _round_up(v, m):
    return ((v + m - 1) // m) * m


def _gcn7_kernel(adj_ref, x_ref, w_ref, b_ref, out_ref, h_ref, sup_ref, *,
                 n_layers, tm):
    """One grid step = (layer, row_block).

    adj_ref : (tm, n_pad)      bf16   streamed row block of adjacency
    x_ref   : (n_pad, f_pad)   f32    input features (constant block, resident)
    w_ref   : (1, f_pad, f_pad) bf16  this layer's weight
    b_ref   : (1, 1, f_pad)    f32    this layer's bias
    out_ref : (tm, f_pad)      f32    output row block
    h_ref   : (n_pad, f_pad)   f32    resident activations (scratch)
    sup_ref : (n_pad, f_pad)   bf16   resident per-layer support = h @ W (scratch)
    """
    layer = pl.program_id(0)
    rblk = pl.program_id(1)

    # Load the input features into the resident activation buffer once.
    @pl.when((layer == 0) & (rblk == 0))
    def _():
        h_ref[...] = x_ref[...]

    # Once per layer: support = h @ W_l over the FULL graph (f32 accumulate on
    # the MXU, stored bf16 so the adjacency contraction is bf16 x bf16).
    @pl.when(rblk == 0)
    def _():
        sup_ref[...] = jnp.dot(
            h_ref[...].astype(jnp.bfloat16), w_ref[0],
            preferred_element_type=jnp.float32,
        ).astype(jnp.bfloat16)

    # Per row block: rows = adj_rows @ support + b, ReLU on all but the last
    # layer.  Bias-add / ReLU stay f32 (VPU path).
    rows = jnp.dot(adj_ref[...], sup_ref[...],
                   preferred_element_type=jnp.float32) + b_ref[0]
    rows = jnp.where(layer < n_layers - 1, jnp.maximum(rows, 0.0), rows)

    # Write back into the resident activations (consumed by the next layer's
    # support computation) and to the output block.  The output is written at
    # every layer; only the last layer's writeback survives in HBM, which keeps
    # the store unconditional and deterministic.
    row0 = pl.multiple_of(rblk * tm, tm)
    h_ref[pl.ds(row0, tm), :] = rows
    out_ref[...] = rows


def prepare_params(params):
    """Pad + stack parameters ONCE (not per forward).

    Every feature dim is padded to a common F (multiple of 128) so all 7
    weights stack into a single (7, F, F) bf16 array and all 7 biases into a
    single (7, 1, F) f32 array (4 kernel operands instead of 16).
    Zero padding is exact (see module header).
    """
    dims = set()
    for w, _ in params:
        dims.update(int(d) for d in w.shape)
    f_pad = _round_up(max(dims), _LANE)

    w_stack = jnp.stack([
        jnp.pad(w, ((0, f_pad - w.shape[0]), (0, f_pad - w.shape[1])))
        for w, _ in params
    ]).astype(jnp.bfloat16)                      # (L, F, F) bf16 (MXU input)
    b_stack = jnp.stack([
        jnp.pad(b, (0, f_pad - b.shape[0])) for _, b in params
    ]).astype(jnp.float32)[:, None, :]           # (L, 1, F) f32 (VPU add)

    nclass = int(params[-1][0].shape[1])
    n_layers = len(params)
    # TODO(synk): if nfeat >> nhid, split gc1's weight out of the stack to
    # avoid padding the hidden layers up to nfeat.
    return w_stack, b_stack, f_pad, n_layers, nclass


def gcn_layer_7_forward(x, adj, prepared):
    """Fused forward pass of GCN_layer_7 (eval mode: dropout is identity)."""
    w_stack, b_stack, f_pad, n_layers, nclass = prepared
    n, nfeat = x.shape

    # Row tile: >=128 (MXU-friendly), 256 for larger graphs.
    tm = min(256, _round_up(n, _LANE))
    n_pad = _round_up(n, tm)
    num_row_blocks = n_pad // tm

    # Per-call padding with jnp.pad (no full-size .at[].set() copies).
    x_p = jnp.pad(x.astype(jnp.float32),
                  ((0, n_pad - n), (0, f_pad - nfeat)))
    adj_p = jnp.pad(adj, ((0, n_pad - n), (0, n_pad - n))).astype(jnp.bfloat16)

    kernel = functools.partial(_gcn7_kernel, n_layers=n_layers, tm=tm)

    # Scoped-VMEM budget from the actual resident footprint (double-buffered
    # streamed operands + resident scratch), with 2x headroom.
    needed = (
        2 * tm * n_pad * 2            # adj row block, bf16, double-buffered
        + 2 * n_pad * f_pad * 4       # x (constant block), f32
        + 2 * f_pad * f_pad * 2       # per-layer weight, bf16
        + 2 * _SUBLANE * f_pad * 4    # per-layer bias
        + 2 * tm * f_pad * 4          # output row block, f32
        + n_pad * f_pad * 4           # h scratch (f32)
        + n_pad * f_pad * 2           # support scratch (bf16)
    )
    vmem_limit = int(min(max(2 * needed, 32 * 1024 * 1024), 128 * 1024 * 1024))

    out_p = pl.pallas_call(
        kernel,
        out_shape=jax.ShapeDtypeStruct((n_pad, f_pad), jnp.float32),
        grid_spec=pltpu.PrefetchScalarGridSpec(
            num_scalar_prefetch=0,
            grid=(n_layers, num_row_blocks),
            in_specs=[
                # adjacency row block, streamed (re-fetched per layer).
                pl.BlockSpec((tm, n_pad), lambda l, r: (r, 0)),
                # input features: constant block -> fetched once, stays resident.
                pl.BlockSpec((n_pad, f_pad), lambda l, r: (0, 0)),
                # this layer's weight / bias.
                pl.BlockSpec((1, f_pad, f_pad), lambda l, r: (l, 0, 0)),
                pl.BlockSpec((1, 1, f_pad), lambda l, r: (l, 0, 0)),
            ],
            out_specs=pl.BlockSpec((tm, f_pad), lambda l, r: (r, 0)),
            scratch_shapes=[
                pltpu.VMEM((n_pad, f_pad), jnp.float32),    # h (activations)
                pltpu.VMEM((n_pad, f_pad), jnp.bfloat16),   # support
            ],
        ),
        compiler_params=pltpu.CompilerParams(
            # Both axes carry state (h/support scratch, output revisits), so
            # they must stay sequential.
            dimension_semantics=("arbitrary", "arbitrary"),
            vmem_limit_bytes=vmem_limit,
        ),
    )(adj_p, x_p, w_stack, b_stack)

    return out_p[:n, :nclass]


def init_gcn_params(key, nfeat, nhid, nclass):
    """Deterministic init matching GraphConvolution.reset_parameters:
       uniform(-stdv, stdv) with stdv = 1/sqrt(out_features)."""
    dims = [(nfeat, nhid), (nhid, nhid), (nhid, nhid), (nhid, nhid),
            (nhid, nhid), (nhid, nhid), (nhid, nclass)]
    params = []
    for (fi, fo) in dims:
        key, kw, kb = jax.random.split(key, 3)
        stdv = 1.0 / jnp.sqrt(jnp.float32(fo))
        w = jax.random.uniform(kw, (fi, fo), jnp.float32, -stdv, stdv)
        b = jax.random.uniform(kb, (fo,), jnp.float32, -stdv, stdv)
        params.append((w, b))
    return params


def reference_forward(x, adj, params):
    """Plain-JAX reference mirroring the kernel's numerics
    (bf16 MXU inputs, f32 accumulation, f32 elementwise)."""
    h = x.astype(jnp.float32)
    adj_bf = adj.astype(jnp.bfloat16)
    for i, (w, b) in enumerate(params):
        support = jnp.dot(h.astype(jnp.bfloat16), w.astype(jnp.bfloat16),
                          preferred_element_type=jnp.float32)
        h = jnp.dot(adj_bf, support.astype(jnp.bfloat16),
                    preferred_element_type=jnp.float32) + b
        if i < len(params) - 1:
            h = jnp.maximum(h, 0.0)
    return h


if __name__ == "__main__":
    key = jax.random.PRNGKey(0)
    k_x, k_adj, k_p = jax.random.split(key, 3)

    # Small graph: 16 nodes, nfeat=32, nhid=64, nclass=8
    N, NFEAT, NHID, NCLASS = 16, 32, 64, 8

    x = jax.random.normal(k_x, (N, NFEAT), jnp.float32)

    # Symmetric row-normalized adjacency with self-loops (typical GCN input)
    a = jax.random.uniform(k_adj, (N, N), jnp.float32)
    a = (a + a.T) * 0.5 + jnp.eye(N, dtype=jnp.float32)
    adj = a / jnp.sum(a, axis=1, keepdims=True)

    params = init_gcn_params(k_p, NFEAT, NHID, NCLASS)
    prepared = prepare_params(params)          # padded + stacked ONCE

    out = gcn_layer_7_forward(x, adj, prepared)
    out = jax.block_until_ready(out)

    ref = reference_forward(x, adj, params)
    assert out.shape == (N, NCLASS)
    max_err = float(jnp.max(jnp.abs(out - ref)))
    assert jnp.allclose(out, ref, atol=2e-3, rtol=2e-3), (
        f"mismatch vs reference (max abs err {max_err})")

    print("KERNEL_OK")
</pallas_src>

<mosaic_0001>
module attributes {stable_mosaic.version = 11 : i64} {
  func.func @_gcn7_kernel(%arg0: i32, %arg1: i32, %arg2: memref<128x128xbf16, #tpu.memory_space<vmem>>, %arg3: memref<128x128xf32, #tpu.memory_space<vmem>>, %arg4: memref<1x128x128xbf16, #tpu.memory_space<vmem>>, %arg5: memref<1x1x128xf32, #tpu.memory_space<vmem>>, %arg6: memref<128x128xf32, #tpu.memory_space<vmem>>, %arg7: memref<128x128xf32, #tpu.memory_space<vmem>>, %arg8: memref<128x128xbf16, #tpu.memory_space<vmem>>) attributes {dimension_semantics = [#tpu.dimension_semantics<arbitrary>, #tpu.dimension_semantics<arbitrary>], iteration_bounds = array<i64: 7, 1>, scalar_prefetch = 0 : i64, scratch_operands = 2 : i64, tpu.core_type = #tpu.core_type<tc>, window_params = [{transform_indices = @transform_0, window_bounds = array<i64: 128, 128>}, {pipeline_mode = #tpu.pipeline_mode<synchronous>, transform_indices = @transform_1, window_bounds = array<i64: 128, 128>}, {transform_indices = @transform_2, window_bounds = array<i64: 1, 128, 128>}, {transform_indices = @transform_3, window_bounds = array<i64: 1, 1, 128>}, {transform_indices = @transform_4, window_bounds = array<i64: 128, 128>}]} {
    %c0_i32 = arith.constant 0 : i32
    %0 = arith.cmpi eq, %arg0, %c0_i32 : i32
    %c0_i32_0 = arith.constant 0 : i32
    %1 = arith.cmpi eq, %arg1, %c0_i32_0 : i32
    %2 = arith.andi %0, %1 : i1
    %3 = arith.extui %2 : i1 to i32
    %c0_i32_1 = arith.constant 0 : i32
    %4 = arith.cmpi ne, %3, %c0_i32_1 : i32
    scf.if %4 {
      %c0_14 = arith.constant 0 : index
      %c0_15 = arith.constant 0 : index
      %24 = vector.load %arg3[%c0_14, %c0_15] : memref<128x128xf32, #tpu.memory_space<vmem>>, vector<128x128xf32>
      %c0_16 = arith.constant 0 : index
      %c0_17 = arith.constant 0 : index
      %25 = vector.load %arg7[%c0_16, %c0_17] : memref<128x128xf32, #tpu.memory_space<vmem>>, vector<128x128xf32>
      tpu.vector_store %arg7[%c0_16, %c0_17], %24 {strides = array<i32>} : memref<128x128xf32, #tpu.memory_space<vmem>>, vector<128x128xf32>,
    } else {
    }
    %c0_i32_2 = arith.constant 0 : i32
    %5 = arith.cmpi eq, %arg1, %c0_i32_2 : i32
    %6 = arith.extui %5 : i1 to i32
    %c0_i32_3 = arith.constant 0 : i32
    %7 = arith.cmpi ne, %6, %c0_i32_3 : i32
    scf.if %7 {
      %c0_14 = arith.constant 0 : index
      %c0_15 = arith.constant 0 : index
      %24 = vector.load %arg7[%c0_14, %c0_15] : memref<128x128xf32, #tpu.memory_space<vmem>>, vector<128x128xf32>
      %25 = arith.truncf %24 : vector<128x128xf32> to vector<128x128xbf16>
      %c0_16 = arith.constant 0 : index
      %c0_17 = arith.constant 0 : index
      %c0_18 = arith.constant 0 : index
      %26 = vector.load %arg4[%c0_16, %c0_17, %c0_18] : memref<1x128x128xbf16, #tpu.memory_space<vmem>>, vector<1x128x128xbf16>
      %27 = vector.shape_cast %26 : vector<1x128x128xbf16> to vector<128x128xbf16>
      %cst_19 = arith.constant dense<0.000000e+00> : vector<128x128xf32>
      %28 = tpu.matmul %25, %27, %cst_19 {dimension_numbers = #tpu.dot_dimension_numbers<[1], [0], [0], [1], [0, 0, 1, 1], [], []>} : vector<128x128xbf16>, vector<128x128xbf16>, vector<128x128xf32> -> vector<128x128xf32>
      %29 = arith.truncf %28 : vector<128x128xf32> to vector<128x128xbf16>
      %c0_20 = arith.constant 0 : index
      %c0_21 = arith.constant 0 : index
      %30 = vector.load %arg8[%c0_20, %c0_21] : memref<128x128xbf16, #tpu.memory_space<vmem>>, vector<128x128xbf16>
      tpu.vector_store %arg8[%c0_20, %c0_21], %29 {strides = array<i32>} : memref<128x128xbf16, #tpu.memory_space<vmem>>, vector<128x128xbf16>,
    } else {
    }
    %c0 = arith.constant 0 : index
    %c0_4 = arith.constant 0 : index
    %8 = vector.load %arg2[%c0, %c0_4] : memref<128x128xbf16, #tpu.memory_space<vmem>>, vector<128x128xbf16>
    %c0_5 = arith.constant 0 : index
    %c0_6 = arith.constant 0 : index
    %9 = vector.load %arg8[%c0_5, %c0_6] : memref<128x128xbf16, #tpu.memory_space<vmem>>, vector<128x128xbf16>
    %cst = arith.constant dense<0.000000e+00> : vector<128x128xf32>
    %10 = tpu.matmul %8, %9, %cst {dimension_numbers = #tpu.dot_dimension_numbers<[1], [0], [0], [1], [0, 0, 1, 1], [], []>} : vector<128x128xbf16>, vector<128x128xbf16>, vector<128x128xf32> -> vector<128x128xf32>
    %c0_7 = arith.constant 0 : index
    %c0_8 = arith.constant 0 : index
    %c0_9 = arith.constant 0 : index
    %11 = vector.load %arg5[%c0_7, %c0_8, %c0_9] : memref<1x1x128xf32, #tpu.memory_space<vmem>>, vector<1x1x128xf32>
    %12 = vector.shape_cast %11 : vector<1x1x128xf32> to vector<1x128xf32>
    %13 = vector.broadcast %12 : vector<1x128xf32> to vector<128x128xf32>
    %14 = arith.addf %10, %13 : vector<128x128xf32>
    %c6_i32 = arith.constant 6 : i32
    %15 = arith.cmpi slt, %arg0, %c6_i32 : i32
    %cst_10 = arith.constant 0.000000e+00 : f32
    %16 = vector.broadcast %cst_10 : f32 to vector<128x128xf32>
    %17 = arith.maximumf %14, %16 : vector<128x128xf32>
    %18 = arith.select %15, %17, %14 : vector<128x128xf32>
    %c128_i32 = arith.constant 128 : i32
    %19 = arith.muli %arg1, %c128_i32 : i32
    %20 = tpu.assume_multiple %19, 128 : i32
    %21 = arith.index_cast %20 : i32 to index
    %c0_11 = arith.constant 0 : index
    %22 = vector.load %arg7[%21, %c0_11] : memref<128x128xf32, #tpu.memory_space<vmem>>, vector<128x128xf32>
    tpu.vector_store %arg7[%21, %c0_11], %18 {strides = array<i32>} : memref<128x128xf32, #tpu.memory_space<vmem>>, vector<128x128xf32>,
    %c0_12 = arith.constant 0 : index
    %c0_13 = arith.constant 0 : index
    %23 = vector.load %arg6[%c0_12, %c0_13] : memref<128x128xf32, #tpu.memory_space<vmem>>, vector<128x128xf32>
    tpu.vector_store %arg6[%c0_12, %c0_13], %18 {strides = array<i32>} : memref<128x128xf32, #tpu.memory_space<vmem>>, vector<128x128xf32>,
    return
  }
  func.func @transform_0(%arg0: i32, %arg1: i32) -> (i32, i32) {
    %c0_i32 = arith.constant 0 : i32
    %c0_i32_0 = arith.constant 0 : i32
    return %arg1, %c0_i32 : i32, i32
  }
  func.func @transform_1(%arg0: i32, %arg1: i32) -> (i32, i32) {
    %c0_i32 = arith.constant 0 : i32
    %c0_i32_0 = arith.constant 0 : i32
    %c0_i32_1 = arith.constant 0 : i32
    return %c0_i32, %c0_i32_0 : i32, i32
  }
  func.func @transform_2(%arg0: i32, %arg1: i32) -> (i32, i32, i32) {
    %c0_i32 = arith.constant 0 : i32
    %c0_i32_0 = arith.constant 0 : i32
    %c0_i32_1 = arith.constant 0 : i32
    return %arg0, %c0_i32, %c0_i32_0 : i32, i32, i32
  }
  func.func @transform_3(%arg0: i32, %arg1: i32) -> (i32, i32, i32) {
    %c0_i32 = arith.constant 0 : i32
    %c0_i32_0 = arith.constant 0 : i32
    %c0_i32_1 = arith.constant 0 : i32
    return %arg0, %c0_i32, %c0_i32_0 : i32, i32, i32
  }
  func.func @transform_4(%arg0: i32, %arg1: i32) -> (i32, i32) {
    %c0_i32 = arith.constant 0 : i32
    %c0_i32_0 = arith.constant 0 : i32
    return %arg1, %c0_i32 : i32, i32
  }
}

</mosaic_0001>

<bundles_post_ra>
// kernel: tpu_custom_call.1
= control target key start
LH: loop header
LB: loop body
LE: loop exit
PB: predicated region body
PF: predicated region fallthrough
CT: control target
= control target key end

     0   :  { %s1822_s0 = inlined_call_operand.hbm [shape: bf16[128,128], index: 0, kind: input, shape index: {}]   ;;  %s1823_s1 = inlined_call_operand.hbm [shape: f32[128,128], index: 1, kind: input, shape index: {}]   ;;  %s1824_s2 = inlined_call_operand.hbm [shape: bf16[7,128,128], index: 2, kind: input, shape index: {}]   ;;  %s1825_s3 = inlined_call_operand.hbm [shape: f32[7,1,128], index: 3, kind: input, shape index: {}]   ;;  %s1826_s4 = inlined_call_operand.hbm [shape: f32[128,128], index: 4, kind: output, shape index: {}]  }
   0x1   :  { %1830 = sst [smem:[#allocation16_spill]] %s1822_s0 }
   0x2   :  { %9 = vsyncpa [#allocation5], 0 }
   0x3   :  { %10 = vsyncpa [#allocation8], 0 }
   0x4   :  { %11 = vsyncpa [#allocation6], 0  ;;  %s1581_s15 = smov 0   ;;  %s1583_s16 = smov 0  }
   0x5   :  { %s1585_s17 = smov 0   ;;  %s1587_s18 = smov 0  }
   0x6   :  { %s1589_s19 = smov 0   ;;  %s1591_s20 = smov 0  }
   0x7 LB: > { %s1610_s21 = sadd.s32 4294967295, %s1543_s20   ;;  %s83_s22 = sadd.s32 1, %s1531_s17  ;;  %s1543_s20 = sphi %s1591_s20, %s17_s20   ;;  %s1539_s19 = sphi %s1589_s19, %s1848_s19   ;;  %s1535_s18 = sphi %s1587_s18, %s1847_s18   ;;  %s1531_s17 = sphi %s1585_s17, %s1846_s17   ;;  %s1527_s16 = sphi %s1583_s16, %s1845_s16   ;;  %s1523_s15 = sphi %s1581_s15, %s1844_s15  }
   0x8   : > { %p90_p0 = scmp.ne.s32.totalorder %s1531_s17, %s1527_s16  ;;  %p91_p1 = scmp.eq.s32.totalorder %s1543_s20, 0 }
   0x9   : > { %p96_p2 = scmp.ne.s32.totalorder %s1527_s16, %s1523_s15  ;;  %p1827_p3 = scmp.eq.s32.totalorder %s1610_s21, 0 }
   0xa   : > { %p92_p4 = por %p91_p1, %p90_p0  ;;  %p1012_p5 = scmp.ge.s32.totalorder %s1543_s20, 1 }
   0xb   : > { %p1621_p6 = por %p1827_p3, %p96_p2  ;;  %p159_p7 = scmp.lt.s32.totalorder %s1543_s20, 8 }
   0xc   : > { %s1545_s25 = smov [#allocation4]   ;;  %p1263_p10 = scmp.lt.s32.totalorder %s1543_s20, 7 }
   0xd   : > { %p1626_p8 = pnand %p1012_p5, %p159_p7  ;;  %s174_s26 = sshll.u32 %s1545_s25, 4  ;;  %s175_s26 = int_to_ptr.vmem [resolvable:$true] %s174_s26 }
   0xe   : > { %p1639_p12 = pnand %p1263_p10, %p92_p4  ;;  %s29_s29 = sadd.s32 1, %s1539_s19 }
   0xf   : > { %p1247_p9 = pneg %p1626_p8  ;;  %s1360_s30 = scalar_lea.vmem %s175_s26, 1024 }
  0x10   : > { %p1361_p0 = scmp.ne.s32.totalorder %s175_s26, %s1360_s30  ;;  %p1368_p5 = scmp.lt.s32.totalorder %s175_s26, %s175_s26 }
  0x11   : > { %p1635_p11 = pnand %p1247_p9, %p1827_p3  ;;  %p1369_p7 = scmp.lt.s32.totalorder %s1360_s30, %s1360_s30 }
  0x13   : > { %p1351_p13 = pneg %p1635_p11  ;;  %p1370_p9 = por %p1369_p7, %p1368_p5 }
  0x15   : > { %p1363_p1 = pnand %p1361_p0, %p1351_p13 }
  0x17   : > { %p1364_p2 = pneg %p1363_p1 }
  0x19   : > { %p1371_p3 = pnand %p1370_p9, %p1364_p2 }
  0x1b   : > { %1374 = shalt.err (!%p1371_p3)
}
  0x1c   : > { %s1828_s5 = smov 64   ;;  %s1547_s6 = smov 4  }
  0x1d   : > { %s1835_s0 = sld [smem:[#allocation16_spill]]  ;;  %p31_p3 = scmp.ge.s32.totalorder %s29_s29, 7 }
  0x1e   : > { %s201_s9 = sand.u32 1, %s1543_s20   ;;  %s1829_s10 = sand.u32 1, %s1531_s17  }
  0x1f   : > { %s1850_s29 = smov (%p31_p3, %s29_s29), 0  ;;  %s1016_s11 = sshll.u32 %s1829_s10, 6 }
  0x20   : > { %s80_s12 = ssub.s32 %s1539_s19, %s1850_s29  ;;  %s1070_s13 = sshll.u32 %s1539_s19, 10 }
  0x21   : > { %p81_p4 = scmp.eq.s32.totalorder %s80_s12, 0  ;;  %s211_s25 = scalar_lea.hbm %s1824_s2, %s1070_s13 }
  0x22   : > { %s205_s30 = scalar_lea.vmem [#allocation9], %s1016_s11  ;;  %s1674_s8 = scalar_lea.sflag [#allocation5], %s201_s9 }
  0x23   : > { %1250 = dma.hbm_to_vmem [thread:$0]  (!%p1635_p11), %s1835_s0, 1024, %s175_s26, [#allocation5], %s1828_s5, %s1828_s5, %s1547_s6  }
  0x24   : > { %s212_s7 = sshll.u32 %s205_s30, 4  ;;  %p1377_p10 = pneg %p1639_p12  ;;  %s213_s7 = int_to_ptr.vmem [resolvable:$true] %s212_s7 }
  0x25   : > { %s1672_s26 = scalar_select %p81_p4, %s1531_s17, %s83_s22  }
  0x26   : > { %s1388_s5 = scalar_lea.vmem %s213_s7, 1024  ;;  %s1548_s12 = smov [#allocation9]  }
  0x27   : > { %p1389_p0 = scmp.ne.s32.totalorder %s213_s7, %s1388_s5  ;;  %s1393_s10 = sshll.u32 %s1548_s12, 4  ;;  %s1394_s10 = int_to_ptr.vmem [resolvable:$false] %s1393_s10 }
  0x28   : > { %s1395_s13 = scalar_lea.vmem %s1394_s10, 2048  ;;  %p1396_p5 = scmp.lt.s32.totalorder %s213_s7, %s1394_s10 }
  0x29   : > { %p1391_p1 = pnand %p1389_p0, %p1377_p10  ;;  %p1397_p7 = scmp.lt.s32.totalorder %s1395_s13, %s1388_s5 }
  0x2b   : > { %p1392_p2 = pneg %p1391_p1  ;;  %p1398_p9 = por %p1397_p7, %p1396_p5 }
  0x2d   : > { %p1399_p3 = pnand %p1398_p9, %p1392_p2 }
  0x2f   : > { %1402 = shalt.err (!%p1399_p3)
}
  0x30   : > { %s1836_s22 = smov 64   ;;  %s1549_s9 = smov [#allocation7]  }
  0x31   : > { %1257 = dma.hbm_to_vmem [thread:$0]  (!%p1639_p12), %s211_s25, 1024, %s213_s7, %s1674_s8, %s1836_s22, %s1836_s22, %s1547_s6  }
  0x32   : > { %s187_s11 = sshll.u32 %s1549_s9, 4  ;;  %s188_s11 = int_to_ptr.vmem [resolvable:$true] %s187_s11 }
  0x33   : > { %s1414_s14 = scalar_lea.vmem %s188_s11, 2048  ;;  %p1422_p5 = scmp.lt.s32.totalorder %s188_s11, %s188_s11 }
  0x34   : > { %p1415_p4 = scmp.ne.s32.totalorder %s188_s11, %s1414_s14  ;;  %p1423_p2 = scmp.lt.s32.totalorder %s1414_s14, %s1414_s14 }
  0x36   : > { %p1417_p0 = pnand %p1415_p4, %p1351_p13  ;;  %p1424_p7 = por %p1423_p2, %p1422_p5 }
  0x38   : > { %p1418_p1 = pneg %p1417_p0 }
  0x3a   : > { %p1425_p9 = pnand %p1424_p7, %p1418_p1 }
  0x3c   : > { %1428 = shalt.err (!%p1425_p9)
}
  0x3d   : > { %s1550_s5 = smov 128   ;;  %s1551_s6 = smov 8  }
  0x3e   : > { %1253 = dma.hbm_to_vmem [thread:$0]  (!%p1635_p11), %s1823_s1, 2048, %s188_s11, [#allocation8], %s1550_s5, %s1550_s5, %s1551_s6  }
  0x3f   : > { %s1019_s25 = sshll.u32 %s1539_s19, 4  ;;  %s1837_s13 = sand.u32 1, %s1531_s17  }
  0x40   : > { %s230_s12 = scalar_lea.hbm %s1825_s3, %s1019_s25  ;;  %s225_s22 = scalar_lea.vmem [#allocation10], %s1837_s13 }
  0x41   : > { %s232_s9 = sshll.u32 %s225_s22, 4  ;;  %s1552_s27 = smov [#allocation10]   ;;  %s233_s9 = int_to_ptr.vmem [resolvable:$true] %s232_s9 }
  0x42   : > { %s1442_s14 = scalar_lea.vmem %s233_s9, 16  ;;  %s1447_s0 = sshll.u32 %s1552_s27, 4  ;;  %s1448_s0 = int_to_ptr.vmem [resolvable:$false] %s1447_s0 }
  0x43   : > { %p1443_p13 = scmp.ne.s32.totalorder %s233_s9, %s1442_s14  ;;  %s1449_s10 = scalar_lea.vmem %s1448_s0, 32 }
  0x44   : > { %p1450_p11 = scmp.lt.s32.totalorder %s233_s9, %s1448_s0  ;;  %p1451_p0 = scmp.lt.s32.totalorder %s1449_s10, %s1442_s14 }
  0x45   : > { %p1445_p3 = pnand %p1443_p13, %p1377_p10 }
  0x46   : > { %p1452_p1 = por %p1451_p0, %p1450_p11 }
  0x47   : > { %p1446_p4 = pneg %p1445_p3 }
  0x49   : > { %p1453_p5 = pnand %p1452_p1, %p1446_p4 }
  0x4b   : > { %1456 = shalt.err (!%p1453_p5)
}
  0x4c   : > { %1260 = dma.hbm_to_vmem [thread:$0]  (!%p1639_p12), %s230_s12, 16, %s233_s9, %s1674_s8  }
  0x4d   : > { %241 = sbr.rel (%p1626_p8) target bundleno = 630 (0x276), region = 36  ;;  %p1838_p2 = scmp.eq.s32.totalorder (!%p1626_p8), %s1610_s21, 0 }
  0x52   : > { %1506 = dma.done.wait (%p1838_p2), [#allocation5], 1024   ;;  %p1839_p10 = pmov %p1838_p2 }
  0x53   : > { %p1840_p7 = pmov %p1838_p2 }
  0x54   : > { %1508 = vsyncadd (%p1839_p10), [#allocation5], 4294966272 }
  0x55   : > { %1510 = dma.done.wait (%p1840_p7), [#allocation8], 2048   ;;  %p1841_p9 = pmov %p1838_p2 }
  0x56   : > { %s251_s0 = sand.u32 1, %s1610_s21   ;;  %s253_s28 = sand.u32 1, %s1527_s16  }
  0x57   : > { %1512 = vsyncadd (%p1841_p9), [#allocation8], 4294965248  ;;  %s1023_s8 = sshll.u32 %s253_s28, 6  ;;  %s252_s24 = scalar_lea.sflag [#allocation5], %s251_s0 }
  0x58   : > { %s1719_s11 = scalar_lea.vmem [#allocation9], %s1023_s8 }
  0x59   : > { %1514 = dma.done.wait (%p1621_p6), %s252_s24, 1040  }
  0x5a   : > { %1516 = vsyncadd (%p1621_p6), %s252_s24, 4294966256  ;;  %p290_p8 = scmp.eq.s32.totalorder %s1535_s18, 0  ;;  %s1726_s5 = scalar_lea.vmem [#allocation10], %s253_s28 }
  0x5b   : > { %v296_v0 = vld [vmem:[#allocation7] sm:$0xff] (%p290_p8)  ;;  %v297_v1 = vld [vmem:[#allocation7 + $0x8] sm:$0xff] (%p290_p8)  ;;  %v298_v2 = vld [vmem:[#allocation7 + $0x10] sm:$0xff] (%p290_p8) }
  0x5c   : > { %295 = sbr.rel (!%p290_p8) target bundleno = 100 (0x64), region = 56  ;;  %312 = vst [vmem:[#allocation2 + $0x30] sm:$0xff] (%p290_p8), %v296_v0  ;;  %313 = vst [vmem:[#allocation2] sm:$0xff] (%p290_p8), %v297_v1  ;;  %v299_v3 = vld [vmem:[#allocation7 + $0x18] sm:$0xff] (%p290_p8)  ;;  %v300_v4 = vld [vmem:[#allocation7 + $0x20] sm:$0xff] (%p290_p8) }
  0x5d   : > { %314 = vst [vmem:[#allocation2 + $0x58] sm:$0xff] (%p290_p8), %v298_v2  ;;  %v301_v5 = vld [vmem:[#allocation7 + $0x28] sm:$0xff] (%p290_p8)  ;;  %315 = vst [vmem:[#allocation2 + $0x18] sm:$0xff] (%p290_p8), %v299_v3  ;;  %v302_v6 = vld [vmem:[#allocation7 + $0x30] sm:$0xff] (%p290_p8) }
  0x5e   : > { %316 = vst [vmem:[#allocation2 + $0x50] sm:$0xff] (%p290_p8), %v300_v4  ;;  %317 = vst [vmem:[#allocation2 + $0x68] sm:$0xff] (%p290_p8), %v301_v5  ;;  %v303_v7 = vld [vmem:[#allocation7 + $0x38] sm:$0xff] (%p290_p8)  ;;  %v304_v8 = vld [vmem:[#allocation7 + $0x40] sm:$0xff] (%p290_p8) }
  0x5f   : > { %318 = vst [vmem:[#allocation2 + $0x8] sm:$0xff] (%p290_p8), %v302_v6  ;;  %319 = vst [vmem:[#allocation2 + $0x48] sm:$0xff] (%p290_p8), %v303_v7  ;;  %v305_v9 = vld [vmem:[#allocation7 + $0x48] sm:$0xff] (%p290_p8)  ;;  %v306_v10 = vld [vmem:[#allocation7 + $0x50] sm:$0xff] (%p290_p8) }
  0x60   : > { %320 = vst [vmem:[#allocation2 + $0x40] sm:$0xff] (%p290_p8), %v304_v8  ;;  %v307_v11 = vld [vmem:[#allocation7 + $0x58] sm:$0xff] (%p290_p8)  ;;  %321 = vst [vmem:[#allocation2 + $0x20] sm:$0xff] (%p290_p8), %v305_v9  ;;  %v308_v12 = vld [vmem:[#allocation7 + $0x60] sm:$0xff] (%p290_p8) }
  0x61   : > { %322 = vst [vmem:[#allocation2 + $0x10] sm:$0xff] %v306_v10  ;;  %323 = vst [vmem:[#allocation2 + $0x38] sm:$0xff] %v307_v11  ;;  %v309_v13 = vld [vmem:[#allocation7 + $0x68] sm:$0xff]  ;;  %v310_v14 = vld [vmem:[#allocation7 + $0x70] sm:$0xff] }
  0x62   : > { %324 = vst [vmem:[#allocation2 + $0x60] sm:$0xff] %v308_v12  ;;  %325 = vst [vmem:[#allocation2 + $0x70] sm:$0xff] %v309_v13  ;;  %v311_v15 = vld [vmem:[#allocation7 + $0x78] sm:$0xff] }
  0x63   : > { %326 = vst [vmem:[#allocation2 + $0x78] sm:$0xff] %v310_v14  ;;  %327 = vst [vmem:[#allocation2 + $0x28] sm:$0xff] %v311_v15 }
  0x64 PF: > { %v1325_v16 = vld [vmem:[%s1719_s11 + $0x38] sm:$0xff]   ;;  %v1326_v17 = vld [vmem:[%s1719_s11 + $0x30] sm:$0xff]   ;;  %v1327_v18 = vld [vmem:[%s1719_s11 + $0x28] sm:$0xff]   ;;  %p828_p6 = scmp.lt.s32.totalorder %s1535_s18, 6  ;;  %s1553_s18 = smov [#allocation11]  }
  0x65   : > { %1167 = vmatprep.subr.bf16.mxu0 %v1325_v16  ;;  %v1328_v19 = vld [vmem:[%s1719_s11 + $0x20] sm:$0xff]   ;;  %v1329_v23 = vld [vmem:[%s1719_s11 + $0x18] sm:$0xff]   ;;  %v1330_v24 = vld [vmem:[%s1719_s11 + $0x10] sm:$0xff]   ;;  %s907_s6 = sshll.u32 %s1553_s18, 4  ;;  %p1266_p12 = scmp.eq.s32.totalorder %s1610_s21, 6  ;;  %s908_s6 = int_to_ptr.vmem [resolvable:$true] %s907_s6 }
  0x66   : > { %1168 = vmatpush3.bf16.msra.mxu0 %v1325_v16  ;;  %v331_v20 = vld [vmem:[#allocation2 + $0x30] sm:$0xff]  ;;  %v332_v21 = vld [vmem:[#allocation2] sm:$0xff]  ;;  %v1331_v25 = vld [vmem:[%s1719_s11 + $0x8] sm:$0xff]   ;;  %s845_s23 = scalar_select %p828_p6, 1, 0 }
  0x67   : > { %1169 = vmatprep.subr.bf16.mxu0 %v1326_v17  ;;  %v347_v22 = vpack.c.bf16 %v332_v21, %v331_v20  ;;  %v1332_v26 = vld [vmem:[%s1719_s11] sm:$0xff]   ;;  %v333_v27 = vld [vmem:[#allocation2 + $0x58] sm:$0xff]  ;;  %v1346_v21 = vld [vmem:[#allocation4 + $0x28] sm:$0xff]   ;;  %s1457_s15 = scalar_lea.vmem %s908_s6, 2048  ;;  %p1464_p11 = scmp.lt.s32.totalorder %s908_s6, %s908_s6 }
  0x68   : > { %v334_v28 = vld [vmem:[#allocation2 + $0x18] sm:$0xff]  ;;  %v335_v29 = vld [vmem:[#allocation2 + $0x50] sm:$0xff]  ;;  %v336_v30 = vld [vmem:[#allocation2 + $0x68] sm:$0xff]  ;;  %p1458_p13 = scmp.ne.s32.totalorder %s908_s6, %s1457_s15  ;;  %p1465_p0 = scmp.lt.s32.totalorder %s1457_s15, %s1457_s15 }
  0x69   : > { %1183 = vmatprep.mubr.bf16.mxu0 %v347_v22  ;;  %v348_v31 = vpack.c.bf16 %v334_v28, %v333_v27  ;;  %v349_v32 = vpack.c.bf16 %v336_v30, %v335_v29  ;;  %v337_v33 = vld [vmem:[#allocation2 + $0x8] sm:$0xff]  ;;  %v343_v41 = vld [vmem:[#allocation2 + $0x60] sm:$0xff]  ;;  %v344_v42 = vld [vmem:[#allocation2 + $0x70] sm:$0xff] }
  0x6a   : > { %1170 = vmatpush3.bf16.msra.mxu0 %v1326_v17  ;;  %v338_v34 = vld [vmem:[#allocation2 + $0x48] sm:$0xff]  ;;  %v339_v35 = vld [vmem:[#allocation2 + $0x40] sm:$0xff]  ;;  %v353_v44 = vpack.c.bf16 %v344_v42, %v343_v41  ;;  %v345_v45 = vld [vmem:[#allocation2 + $0x78] sm:$0xff]  ;;  %p1459_p3 = pnand %p1458_p13, %p1266_p12  ;;  %p1466_p1 = por %p1465_p0, %p1464_p11 }
  0x6b   : > { %1171 = vmatprep.subr.bf16.mxu0 %v1327_v18  ;;  %v340_v36 = vld [vmem:[#allocation2 + $0x20] sm:$0xff]  ;;  %v350_v37 = vpack.c.bf16 %v338_v34, %v337_v33  ;;  %v341_v39 = vld [vmem:[#allocation2 + $0x10] sm:$0xff]  ;;  %v342_v40 = vld [vmem:[#allocation2 + $0x38] sm:$0xff] }
  0x6c   : > { %v351_v38 = vpack.c.bf16 %v340_v36, %v339_v35  ;;  %v352_v43 = vpack.c.bf16 %v342_v40, %v341_v39  ;;  %v346_v46 = vld [vmem:[#allocation2 + $0x28] sm:$0xff]  ;;  %v1341_v48 = vld [vmem:[#allocation4] sm:$0xff]   ;;  %v1347_v22 = vld [vmem:[#allocation4 + $0x30] sm:$0xff]   ;;  %p1460_p4 = pneg %p1459_p3 }
  0x6d   : > { %v354_v47 = vpack.c.bf16 %v346_v46, %v345_v45  ;;  %1215 = vmatprep.mubr.bf16.mxu1 %v1341_v48  ;;  %v1342_v17 = vld [vmem:[#allocation4 + $0x8] sm:$0xff]   ;;  %v1345_v20 = vld [vmem:[#allocation4 + $0x20] sm:$0xff]  }
  0x6e   : > { %1172 = vmatpush3.bf16.msra.mxu0 %v1327_v18  ;;  %v1343_v18 = vld [vmem:[#allocation4 + $0x10] sm:$0xff]   ;;  %p1467_p5 = pnand %p1466_p1, %p1460_p4 }
  0x6f   : > { %1173 = vmatprep.subr.bf16.mxu0 %v1328_v19 }
  0x72   : > { %1174 = vmatpush3.bf16.msra.mxu0 %v1328_v19  ;;  %v1344_v19 = vld [vmem:[#allocation4 + $0x18] sm:$0xff]  }
  0x73   : > { %1175 = vmatprep.subr.bf16.mxu0 %v1329_v23 }
  0x76   : > { %1176 = vmatpush3.bf16.msra.mxu0 %v1329_v23  ;;  %v1348_v23 = vld [vmem:[#allocation4 + $0x38] sm:$0xff]  }
  0x77   : > { %1177 = vmatprep.subr.bf16.mxu0 %v1330_v24 }
  0x7a   : > { %1178 = vmatpush3.bf16.msra.mxu0 %v1330_v24  ;;  %v1738_v24 = vld [vmem:[%s1726_s5] ss:$0 sm:$0xff] }
  0x7b   : > { %1179 = vmatprep.subr.bf16.mxu0 %v1331_v25 }
  0x7e   : > { %1180 = vmatpush3.bf16.msra.mxu0 %v1331_v25  ;;  %v846_v25 = vstv %s845_s23 }
  0x7f   : > { %1181 = vmatprep.subr.bf16.mxu0 %v1332_v26  ;;  %vm1741_vm0 = vcmp.eq.s32.totalorder %v846_v25, 1 }
  0x82   : > { %1182 = vmatpush3.bf16.msra.mxu0 %v1332_v26 }
  0x85   : > { %1184 = vmatmul.mubr.bf16.vlgmr.msra.gmra.mxu0 %v348_v31 }
  0x86   : > { %1187 = vmatprep.mubr.bf16.mxu0 %v349_v32 }
  0x8d   : > { %1188 = vmatmul.mubr.bf16.gmra.mxu0 %v350_v37 }
  0x8e   : > { %1191 = vmatprep.mubr.bf16.mxu0 %v351_v38 }
  0x95   : > { %1192 = vmatmul.mubr.bf16.gmra.mxu0 %v352_v43 }
  0x96   : > { %1195 = vmatprep.mubr.bf16.mxu0 %v353_v44 }
  0x9d   : > { %1196 = vmatmul.mubr.bf16.gmra.mxu0 %v354_v47 }
 0x145   : > { %v1185_v49 = vpop.f32.mrf.mxu0 }
 0x147   : > { %v453_v50 = vpop.f32.mrf.mxu0 }
 0x149   : > { %v1186_v51 = vpop.f32.mrf.mxu0 }
 0x14a   : > { %v1096_v52 = vpack.c.bf16 %v1186_v51, %v1185_v49 }
 0x14b   : > { %v456_v53 = vpop.f32.mrf.mxu0 }
 0x14c   : > { %1128 = vst [vmem:[#allocation3 + $0x8] sm:$0xff] %v1096_v52   ;;  %v1091_v54 = vpack.c.bf16 %v456_v53, %v453_v50 }
 0x14d   : > { %v1189_v55 = vpop.f32.mrf.mxu0 }
 0x14e   : > { %1092 = vst [vmem:[#allocation3] sm:$0xff] %v1091_v54  }
 0x14f   : > { %v469_v56 = vpop.f32.mrf.mxu0 }
 0x151   : > { %v1190_v57 = vpop.f32.mrf.mxu0 }
 0x152   : > { %v1106_v58 = vpack.c.bf16 %v1190_v57, %v1189_v55 }
 0x153   : > { %v472_v59 = vpop.f32.mrf.mxu0  ;;  %v1339_v15 = vld [vmem:[#allocation3 + $0x8] sm:$0xff]  }
 0x154   : > { %1130 = vst [vmem:[#allocation3 + $0x18] sm:$0xff] %v1106_v58   ;;  %v1101_v60 = vpack.c.bf16 %v472_v59, %v469_v56 }
 0x155   : > { %v1193_v61 = vpop.f32.mrf.mxu0  ;;  %v1340_v16 = vld [vmem:[#allocation3] sm:$0xff]  }
 0x156   : > { %1129 = vst [vmem:[#allocation3 + $0x10] sm:$0xff] %v1101_v60  }
 0x157   : > { %v485_v62 = vpop.f32.mrf.mxu0 }
 0x159   : > { %v1194_v63 = vpop.f32.mrf.mxu0 }
 0x15a   : > { %v1116_v0 = vpack.c.bf16 %v1194_v63, %v1193_v61 }
 0x15b   : > { %v488_v1 = vpop.f32.mrf.mxu0  ;;  %v1337_v13 = vld [vmem:[#allocation3 + $0x18] sm:$0xff]  }
 0x15c   : > { %1132 = vst [vmem:[#allocation3 + $0x28] sm:$0xff] %v1116_v0   ;;  %v1111_v2 = vpack.c.bf16 %v488_v1, %v485_v62 }
 0x15d   : > { %v1197_v3 = vpop.f32.mrf.mxu0  ;;  %v1338_v14 = vld [vmem:[#allocation3 + $0x10] sm:$0xff]  }
 0x15e   : > { %1131 = vst [vmem:[#allocation3 + $0x20] sm:$0xff] %v1111_v2  }
 0x15f   : > { %v501_v4 = vpop.f32.mrf.mxu0 }
 0x161   : > { %v1198_v5 = vpop.f32.mrf.mxu0 }
 0x162   : > { %v1126_v6 = vpack.c.bf16 %v1198_v5, %v1197_v3 }
 0x163   : > { %v504_v7 = vpop.f32.mrf.mxu0  ;;  %v1335_v11 = vld [vmem:[#allocation3 + $0x28] sm:$0xff]  }
 0x164   : > { %1134 = vst [vmem:[#allocation3 + $0x38] sm:$0xff] %v1126_v6   ;;  %v1121_v8 = vpack.c.bf16 %v504_v7, %v501_v4 }
 0x165   : > { %v1336_v12 = vld [vmem:[#allocation3 + $0x20] sm:$0xff]  }
 0x166   : > { %1133 = vst [vmem:[#allocation3 + $0x30] sm:$0xff] %v1121_v8  }
 0x16b   : > { %v1333_v9 = vld [vmem:[#allocation3 + $0x38] sm:$0xff]  }
 0x16c   : > { %1199 = vmatprep.subr.bf16.mxu1 %v1333_v9 }
 0x16d   : > { %v1334_v10 = vld [vmem:[#allocation3 + $0x30] sm:$0xff]   ;;  %1200 = vmatpush3.bf16.msra.mxu1 %v1333_v9 }
 0x16e   : > { %1201 = vmatprep.subr.bf16.mxu1 %v1334_v10 }
 0x171   : > { %1202 = vmatpush3.bf16.msra.mxu1 %v1334_v10 }
 0x172   : > { %1203 = vmatprep.subr.bf16.mxu1 %v1335_v11 }
 0x175   : > { %1204 = vmatpush3.bf16.msra.mxu1 %v1335_v11 }
 0x176   : > { %1205 = vmatprep.subr.bf16.mxu1 %v1336_v12 }
 0x179   : > { %1206 = vmatpush3.bf16.msra.mxu1 %v1336_v12 }
 0x17a   : > { %1207 = vmatprep.subr.bf16.mxu1 %v1337_v13 }
 0x17d   : > { %1208 = vmatpush3.bf16.msra.mxu1 %v1337_v13 }
 0x17e   : > { %1209 = vmatprep.subr.bf16.mxu1 %v1338_v14 }
 0x181   : > { %1210 = vmatpush3.bf16.msra.mxu1 %v1338_v14 }
 0x182   : > { %1211 = vmatprep.subr.bf16.mxu1 %v1339_v15 }
 0x185   : > { %1212 = vmatpush3.bf16.msra.mxu1 %v1339_v15 }
 0x186   : > { %1213 = vmatprep.subr.bf16.mxu1 %v1340_v16 }
 0x189   : > { %1214 = vmatpush3.bf16.msra.mxu1 %v1340_v16 }
 0x18c   : > { %1216 = vmatmul.mubr.bf16.vlgmr.msra.gmra.mxu1 %v1342_v17 }
 0x18d   : > { %1219 = vmatprep.mubr.bf16.mxu1 %v1343_v18 }
 0x194   : > { %1220 = vmatmul.mubr.bf16.gmra.mxu1 %v1344_v19 }
 0x195   : > { %1223 = vmatprep.mubr.bf16.mxu1 %v1345_v20 }
 0x19c   : > { %1224 = vmatmul.mubr.bf16.gmra.mxu1 %v1346_v21 }
 0x19d   : > { %1227 = vmatprep.mubr.bf16.mxu1 %v1347_v22 }
 0x1a4   : > { %1228 = vmatmul.mubr.bf16.gmra.mxu1 %v1348_v23 }
 0x24c   : > { %v1217_v26 = vpop.f32.mrf.mxu1 }
 0x24d   : > { %v774_v27 = vadd.f32 %v1217_v26, %v1738_v24 }
 0x24e   : > { %v765_v29 = vpop.f32.mrf.mxu1 }
 0x24f   : > { %v831_v30 = vmax.f32 %v774_v27, 0.0  ;;  %v766_v31 = vadd.f32 %v1738_v24, %v765_v29 }
 0x250   : > { %v1218_v32 = vpop.f32.mrf.mxu1 }
 0x251   : > { %v850_v33 = vsel %vm1741_vm0, %v831_v30, %v774_v27  ;;  %v829_v34 = vmax.f32 %v766_v31, 0.0  ;;  %v777_v35 = vadd.f32 %v1218_v32, %v1738_v24 }
 0x252   : > { %868 = vst [vmem:[#allocation2 + $0x58] sm:$0xff] %v850_v33  ;;  %884 = vst [vmem:[#allocation11 + $0x10] sm:$0xff] %v850_v33  ;;  %v768_v36 = vpop.f32.mrf.mxu1 }
 0x253   : > { %v848_v37 = vsel %vm1741_vm0, %v829_v34, %v766_v31  ;;  %v832_v38 = vmax.f32 %v777_v35, 0.0  ;;  %v769_v39 = vadd.f32 %v1738_v24, %v768_v36 }
 0x254   : > { %866 = vst [vmem:[#allocation2 + $0x30] sm:$0xff] %v848_v37  ;;  %882 = vst [vmem:[#allocation11] sm:$0xff] %v848_v37  ;;  %v1221_v40 = vpop.f32.mrf.mxu1 }
 0x255   : > { %v851_v41 = vsel %vm1741_vm0, %v832_v38, %v777_v35  ;;  %v830_v42 = vmax.f32 %v769_v39, 0.0  ;;  %v790_v43 = vadd.f32 %v1221_v40, %v1738_v24 }
 0x256   : > { %869 = vst [vmem:[#allocation2 + $0x18] sm:$0xff] %v851_v41  ;;  %885 = vst [vmem:[#allocation11 + $0x18] sm:$0xff] %v851_v41  ;;  %v781_v44 = vpop.f32.mrf.mxu1 }
 0x257   : > { %v849_v45 = vsel %vm1741_vm0, %v830_v42, %v769_v39  ;;  %v835_v46 = vmax.f32 %v790_v43, 0.0  ;;  %v782_v47 = vadd.f32 %v1738_v24, %v781_v44 }
 0x258   : > { %867 = vst [vmem:[#allocation2] sm:$0xff] %v849_v45  ;;  %883 = vst [vmem:[#allocation11 + $0x8] sm:$0xff] %v849_v45  ;;  %v1222_v48 = vpop.f32.mrf.mxu1 }
 0x259   : > { %v854_v49 = vsel %vm1741_vm0, %v835_v46, %v790_v43  ;;  %v833_v50 = vmax.f32 %v782_v47, 0.0  ;;  %v793_v51 = vadd.f32 %v1222_v48, %v1738_v24 }
 0x25a   : > { %872 = vst [vmem:[#allocation2 + $0x8] sm:$0xff] %v854_v49  ;;  %888 = vst [vmem:[#allocation11 + $0x30] sm:$0xff] %v854_v49  ;;  %v784_v52 = vpop.f32.mrf.mxu1 }
 0x25b   : > { %v852_v53 = vsel %vm1741_vm0, %v833_v50, %v782_v47  ;;  %v836_v54 = vmax.f32 %v793_v51, 0.0  ;;  %v785_v55 = vadd.f32 %v1738_v24, %v784_v52 }
 0x25c   : > { %870 = vst [vmem:[#allocation2 + $0x50] sm:$0xff] %v852_v53  ;;  %886 = vst [vmem:[#allocation11 + $0x20] sm:$0xff] %v852_v53  ;;  %v1225_v56 = vpop.f32.mrf.mxu1 }
 0x25d   : > { %v855_v57 = vsel %vm1741_vm0, %v836_v54, %v793_v51  ;;  %v834_v58 = vmax.f32 %v785_v55, 0.0  ;;  %v806_v59 = vadd.f32 %v1225_v56, %v1738_v24 }
 0x25e   : > { %873 = vst [vmem:[#allocation2 + $0x48] sm:$0xff] %v855_v57  ;;  %889 = vst [vmem:[#allocation11 + $0x38] sm:$0xff] %v855_v57  ;;  %v797_v60 = vpop.f32.mrf.mxu1 }
 0x25f   : > { %v853_v61 = vsel %vm1741_vm0, %v834_v58, %v785_v55  ;;  %v839_v62 = vmax.f32 %v806_v59, 0.0  ;;  %v798_v63 = vadd.f32 %v1738_v24, %v797_v60 }
 0x260   : > { %871 = vst [vmem:[#allocation2 + $0x68] sm:$0xff] %v853_v61  ;;  %887 = vst [vmem:[#allocation11 + $0x28] sm:$0xff] %v853_v61  ;;  %v1226_v0 = vpop.f32.mrf.mxu1 }
 0x261   : > { %v858_v1 = vsel %vm1741_vm0, %v839_v62, %v806_v59  ;;  %v837_v2 = vmax.f32 %v798_v63, 0.0  ;;  %v809_v3 = vadd.f32 %v1226_v0, %v1738_v24 }
 0x262   : > { %876 = vst [vmem:[#allocation2 + $0x10] sm:$0xff] %v858_v1  ;;  %892 = vst [vmem:[#allocation11 + $0x50] sm:$0xff] %v858_v1  ;;  %v800_v4 = vpop.f32.mrf.mxu1 }
 0x263   : > { %v856_v5 = vsel %vm1741_vm0, %v837_v2, %v798_v63  ;;  %v840_v6 = vmax.f32 %v809_v3, 0.0  ;;  %v801_v7 = vadd.f32 %v1738_v24, %v800_v4 }
 0x264   : > { %874 = vst [vmem:[#allocation2 + $0x40] sm:$0xff] %v856_v5  ;;  %890 = vst [vmem:[#allocation11 + $0x40] sm:$0xff] %v856_v5  ;;  %v1229_v8 = vpop.f32.mrf.mxu1 }
 0x265   : > { %v859_v9 = vsel %vm1741_vm0, %v840_v6, %v809_v3  ;;  %v838_v10 = vmax.f32 %v801_v7, 0.0  ;;  %v822_v11 = vadd.f32 %v1229_v8, %v1738_v24 }
 0x266   : > { %877 = vst [vmem:[#allocation2 + $0x38] sm:$0xff] %v859_v9  ;;  %893 = vst [vmem:[#allocation11 + $0x58] sm:$0xff] %v859_v9  ;;  %v813_v12 = vpop.f32.mrf.mxu1 }
 0x267   : > { %v857_v13 = vsel %vm1741_vm0, %v838_v10, %v801_v7  ;;  %v843_v14 = vmax.f32 %v822_v11, 0.0  ;;  %v814_v15 = vadd.f32 %v1738_v24, %v813_v12 }
 0x268   : > { %875 = vst [vmem:[#allocation2 + $0x20] sm:$0xff] %v857_v13  ;;  %891 = vst [vmem:[#allocation11 + $0x48] sm:$0xff] %v857_v13  ;;  %v1230_v16 = vpop.f32.mrf.mxu1 }
 0x269   : > { %v862_v17 = vsel %vm1741_vm0, %v843_v14, %v822_v11  ;;  %v841_v18 = vmax.f32 %v814_v15, 0.0  ;;  %v825_v19 = vadd.f32 %v1230_v16, %v1738_v24 }
 0x26a   : > { %880 = vst [vmem:[#allocation2 + $0x78] sm:$0xff] %v862_v17  ;;  %896 = vst [vmem:[#allocation11 + $0x70] sm:$0xff] %v862_v17  ;;  %v816_v20 = vpop.f32.mrf.mxu1 }
 0x26b   : > { %v860_v21 = vsel %vm1741_vm0, %v841_v18, %v814_v15  ;;  %v844_v22 = vmax.f32 %v825_v19, 0.0  ;;  %v817_v23 = vadd.f32 %v1738_v24, %v816_v20 }
 0x26c   : > { %878 = vst [vmem:[#allocation2 + $0x60] sm:$0xff] %v860_v21  ;;  %894 = vst [vmem:[#allocation11 + $0x60] sm:$0xff] %v860_v21 }
 0x26d   : > { %v863_v25 = vsel %vm1741_vm0, %v844_v22, %v825_v19  ;;  %v842_v26 = vmax.f32 %v817_v23, 0.0 }
 0x26e   : > { %881 = vst [vmem:[#allocation2 + $0x28] sm:$0xff] %v863_v25  ;;  %897 = vst [vmem:[#allocation11 + $0x78] sm:$0xff] %v863_v25 }
 0x26f   : > { %v861_v27 = vsel %vm1741_vm0, %v842_v26, %v817_v23 }
 0x270   : > { %879 = vst [vmem:[#allocation2 + $0x70] sm:$0xff] %v861_v27  ;;  %895 = vst [vmem:[#allocation11 + $0x68] sm:$0xff] %v861_v27 }
 0x271   : > { %1470 = shalt.err (!%p1467_p5)
}
 0x272   : > { %s1554_s25 = smov 128   ;;  %s1555_s30 = smov 8  }
 0x273   : > { %1244 = dma.vmem_to_hbm [thread:$0]  (%p1266_p12), %s908_s6, 2048, %s1826_s4, [#allocation6], %s1554_s25, %s1554_s25, %s1555_s30  }
 0x274   : > { %1518 = dma.done.wait (%p1266_p12), [#allocation6], 2048  }
 0x275   : > { %1520 = vsyncadd (%p1266_p12), [#allocation6], 4294965248 }
 0x276 PF: > { %s17_s20 = sadd.s32 1, %s1543_s20   ;;  %s1844_s15 = smov %s1527_s16 }
 0x277   : > { %p14_p2 = scmp.ge.s32.totalorder %s17_s20, 9   ;;  %s1845_s16 = smov %s1531_s17 }
 0x278   : > { %s1846_s17 = smov %s1672_s26  ;;  %s1847_s18 = smov %s1539_s19 }
 0x279   : > { %s1848_s19 = smov %s1850_s29  ;;  %16 = sbr.rel (!%p14_p2) target bundleno = 7 (0x7), region = 102 }
 0x27e   :  { %923 = vsyncpa [#allocation5], 1 }
 0x27f   :  { %925 = vsyncpa [#allocation5 + $0x1], 1 }
 0x280   :  { %926 = vsyncpa [#allocation8], 1 }
 0x281   :  { %927 = vsyncpa [#allocation6], 1 }
 0x282   :  { %929 = vsyncpa [#allocation6 + $0x1], 1 }

</bundles_post_ra>
